<compile_context>
chip_gen: v5e
topology: v5e:2x2
jax: 0.10.0
libtpu: 0.0.40
codegen_flags: <defaults>
</compile_context>

<pallas_src>
import math

import jax
import jax.numpy as jnp
from jax.experimental import pallas as pl
from jax.experimental.pallas import tpu as pltpu


# ----------------------------- Pallas kernel -------------------------------

def _critic_kernel(xo_ref, xa_ref,
                   w1o_ref, w1a_ref, b1_ref,
                   w2_ref, b2_ref,
                   w3_ref, b3_ref,
                   out_ref):
    """One batch-tile step of the critic MLP with all critics folded into lanes.

    Block shapes seen by the kernel (C = n_critics):
      xo_ref : (TB, F)            obs-features tile
      xa_ref : (TB, A)            actions tile
      w1o    : (F, C*H1)          layer-1 weights, obs rows, all critics side by side
      w1a    : (A, C*H1)          layer-1 weights, action rows
      b1     : (1, C*H1)
      w2     : (C*H1, C*H2)       block-diagonal (per-critic blocks, cross terms zero)
      b2     : (1, C*H2)
      w3     : (C*H2, C)          block-column final layer
      b3     : (1, C)
      out    : (TB, C)            Q-values, one lane per critic
    """
    # Layer 1 (host concat fused as a split matmul) + ReLU
    h = jnp.dot(xo_ref[...], w1o_ref[...], preferred_element_type=jnp.float32)
    h = h + jnp.dot(xa_ref[...], w1a_ref[...], preferred_element_type=jnp.float32)
    h = jnp.maximum(h + b1_ref[...], 0.0)                                 # (TB, C*H1)

    # Layer 2 (block-diagonal => per-critic independent) + ReLU
    h = jnp.dot(h, w2_ref[...], preferred_element_type=jnp.float32)
    h = jnp.maximum(h + b2_ref[...], 0.0)                                 # (TB, C*H2)

    # Final layer: single narrow matmul producing all critics' Q at once.
    q = jnp.dot(h, w3_ref[...], preferred_element_type=jnp.float32) + b3_ref[...]
    out_ref[...] = q.astype(out_ref.dtype)                                # (TB, C)


def _pick_batch_tile(batch):
    """Whole batch up to 4096 rows (single fat tile); otherwise a large tile.

    Working set at TB=4096, F=32 is only a few MiB: trivially within v7x's
    64 MiB physical / 32 MiB default-scoped VMEM and v5e/v6e's 128 MiB.
    """
    if batch <= 4096:
        return batch
    for tb in (4096, 2048, 1024, 512):
        if batch % tb == 0:
            return tb
    return 2048  # non-divisible large batch: wrapper zero-pads the last tile


def _critics_pallas(x_obs, x_act, params):
    """Run all folded critics in one pallas_call. Returns (B, n_critics) f32."""
    w1o, w1a, b1 = params["w1_obs"], params["w1_act"], params["b1"]
    w2, b2 = params["w2"], params["b2"]
    w3, b3 = params["w3"], params["b3"]

    F, CH1 = w1o.shape
    A = w1a.shape[0]
    CH2 = w2.shape[1]
    C = w3.shape[1]
    B = x_obs.shape[0]

    TB = _pick_batch_tile(B)
    n_bt = pl.cdiv(B, TB)
    Bp = n_bt * TB
    if Bp != B:
        pad = Bp - B
        x_obs = jnp.pad(x_obs, ((0, pad), (0, 0)))
        x_act = jnp.pad(x_act, ((0, pad), (0, 0)))

    flops = 2 * Bp * ((F + A) * CH1 + CH1 * CH2 + CH2 * C)
    bytes_accessed = 4 * (Bp * (F + A + C)
                          + w1o.size + w1a.size + b1.size
                          + w2.size + b2.size + w3.size + b3.size)
    cost = pl.CostEstimate(flops=flops, transcendentals=0,
                           bytes_accessed=bytes_accessed)

    out = pl.pallas_call(
        _critic_kernel,
        out_shape=jax.ShapeDtypeStruct((Bp, C), jnp.float32),
        grid=(n_bt,),
        in_specs=[
            # Activations: tiled over the (only) batch grid axis — streamed once.
            pl.BlockSpec((TB, F), lambda b: (b, 0)),
            pl.BlockSpec((TB, A), lambda b: (b, 0)),
            # Parameters: same block every step — stay VMEM-resident across tiles.
            pl.BlockSpec((F, CH1), lambda b: (0, 0)),
            pl.BlockSpec((A, CH1), lambda b: (0, 0)),
            pl.BlockSpec((1, CH1), lambda b: (0, 0)),
            pl.BlockSpec((CH1, CH2), lambda b: (0, 0)),
            pl.BlockSpec((1, CH2), lambda b: (0, 0)),
            pl.BlockSpec((CH2, C), lambda b: (0, 0)),
            pl.BlockSpec((1, C), lambda b: (0, 0)),
        ],
        out_specs=pl.BlockSpec((TB, C), lambda b: (b, 0)),
        compiler_params=pltpu.CompilerParams(
            dimension_semantics=("parallel",)),   # v7x: TCs split batch tiles
        cost_estimate=cost,
    )(x_obs, x_act, w1o, w1a, b1, w2, b2, w3, b3)

    return out[:B]                                                         # (B, C)


# --------------------------- ContinuousCritic glue --------------------------

def _init_linear(key, fan_in, fan_out):
    """torch.nn.Linear-style init: uniform in [-1/sqrt(fan_in), 1/sqrt(fan_in)].
    Weight stored as (in, out) so the kernel computes x @ W (== torch x @ W.T)."""
    kw, kb = jax.random.split(key)
    bound = 1.0 / math.sqrt(fan_in)
    w = jax.random.uniform(kw, (fan_in, fan_out), jnp.float32, -bound, bound)
    b = jax.random.uniform(kb, (1, fan_out), jnp.float32, -bound, bound)
    return w, b


def _block_diag(blocks):
    """Block-diagonal assembly of a list of 2-D arrays."""
    n = len(blocks)
    rows = []
    for i, blk in enumerate(blocks):
        row = [blk if j == i
               else jnp.zeros((blk.shape[0], blocks[j].shape[1]), blk.dtype)
               for j in range(n)]
        rows.append(jnp.concatenate(row, axis=1))
    return jnp.concatenate(rows, axis=0)


def init_continuous_critic_params(key, features_dim, action_dim, net_arch, n_critics=2):
    """Build lane-folded parameters for the fused kernel.

    Layout (C = n_critics): critics are stacked along the feature (lane) axis;
    layer 2 is block-diagonal and layer 3 is block-column, so critics stay
    mathematically independent while sharing one kernel.
    """
    # TODO(synk): kernel handles exactly two hidden layers (SB3 default for SAC/TD3);
    #             arbitrary-depth net_arch would need a generalized kernel body.
    assert len(net_arch) == 2, "this kernel supports net_arch=[H1, H2]"
    F, A = features_dim, action_dim
    H1, H2 = net_arch
    in_dim = F + A

    w1s, b1s, w2s, b2s, w3s, b3s = [], [], [], [], [], []
    for _ in range(n_critics):
        key, k1, k2, k3 = jax.random.split(key, 4)
        w1, b1 = _init_linear(k1, in_dim, H1)
        w2, b2 = _init_linear(k2, H1, H2)
        w3, b3 = _init_linear(k3, H2, 1)
        w1s.append(w1); b1s.append(b1)
        w2s.append(w2); b2s.append(b2)
        w3s.append(w3); b3s.append(b3)

    w1 = jnp.concatenate(w1s, axis=1)                     # (F+A, C*H1)
    return {
        "w1_obs": w1[:F, :],                              # (F, C*H1)
        "w1_act": w1[F:, :],                              # (A, C*H1)
        "b1": jnp.concatenate(b1s, axis=1),               # (1, C*H1)
        "w2": _block_diag(w2s),                           # (C*H1, C*H2) block-diag
        "b2": jnp.concatenate(b2s, axis=1),               # (1, C*H2)
        "w3": _block_diag(w3s),                           # (C*H2, C)   block-column
        "b3": jnp.concatenate(b3s, axis=1),               # (1, C)
    }


def continuous_critic_forward(obs, actions, params):
    """Mirrors ContinuousCritic.forward: returns a tuple of (B, 1) Q-values."""
    B = obs.shape[0]
    x_obs = obs.reshape(B, -1).astype(jnp.float32)        # FlattenExtractor (view only)
    x_act = actions.astype(jnp.float32)
    q_all = _critics_pallas(x_obs, x_act, params)         # (B, n_critics)
    C = q_all.shape[1]
    return tuple(q_all[:, c:c + 1] for c in range(C))


# ---------------------------------- main ------------------------------------

if __name__ == "__main__":
    key = jax.random.PRNGKey(0)

    # Small shapes consistent with the module:
    B = 2                    # batch
    obs_shape = (4, 8)       # arbitrary obs; FlattenExtractor -> features_dim = 32
    features_dim = 32
    action_dim = 8
    net_arch = [32, 32]      # two hidden layers, ReLU activations
    n_critics = 2            # default clipped double-Q

    k_obs, k_act, k_par = jax.random.split(key, 3)
    obs = jax.random.normal(k_obs, (B,) + obs_shape, dtype=jnp.float32)
    actions = jax.random.normal(k_act, (B, action_dim), dtype=jnp.float32)

    params = init_continuous_critic_params(
        k_par, features_dim, action_dim, net_arch, n_critics=n_critics
    )

    q_values = continuous_critic_forward(obs, actions, params)
    q_values = jax.block_until_ready(q_values)

    # Pure-JAX reference check of the original per-critic concat formulation.
    H1, H2 = net_arch
    feats = obs.reshape(B, -1)
    x = jnp.concatenate([feats, actions], axis=1)          # th.cat([features, actions], 1)
    for c, q in enumerate(q_values):
        w1_c = jnp.concatenate(
            [params["w1_obs"][:, c * H1:(c + 1) * H1],
             params["w1_act"][:, c * H1:(c + 1) * H1]], axis=0)
        b1_c = params["b1"][:, c * H1:(c + 1) * H1]
        w2_c = params["w2"][c * H1:(c + 1) * H1, c * H2:(c + 1) * H2]
        b2_c = params["b2"][:, c * H2:(c + 1) * H2]
        w3_c = params["w3"][c * H2:(c + 1) * H2, c:c + 1]
        b3_c = params["b3"][:, c:c + 1]

        h = jnp.maximum(x @ w1_c + b1_c, 0.0)
        h = jnp.maximum(h @ w2_c + b2_c, 0.0)
        ref = h @ w3_c + b3_c
        assert q.shape == (B, 1)
        assert jnp.allclose(q, ref, atol=1e-5, rtol=1e-5)

    print("KERNEL_OK")
</pallas_src>

<mosaic_0001>
module attributes {stable_mosaic.version = 11 : i64} {
  func.func @_critic_kernel(%arg0: i32, %arg1: memref<2x32xf32, #tpu.memory_space<vmem>>, %arg2: memref<2x8xf32, #tpu.memory_space<vmem>>, %arg3: memref<32x64xf32, #tpu.memory_space<vmem>>, %arg4: memref<8x64xf32, #tpu.memory_space<vmem>>, %arg5: memref<1x64xf32, #tpu.memory_space<vmem>>, %arg6: memref<64x64xf32, #tpu.memory_space<vmem>>, %arg7: memref<1x64xf32, #tpu.memory_space<vmem>>, %arg8: memref<64x2xf32, #tpu.memory_space<vmem>>, %arg9: memref<1x2xf32, #tpu.memory_space<vmem>>, %arg10: memref<2x2xf32, #tpu.memory_space<vmem>>) attributes {dimension_semantics = [#tpu.dimension_semantics<parallel>], iteration_bounds = array<i64: 1>, scalar_prefetch = 0 : i64, scratch_operands = 0 : i64, tpu.core_type = #tpu.core_type<tc>, window_params = [{transform_indices = @transform_0, window_bounds = array<i64: 2, 32>}, {transform_indices = @transform_1, window_bounds = array<i64: 2, 8>}, {pipeline_mode = #tpu.pipeline_mode<synchronous>, transform_indices = @transform_2, window_bounds = array<i64: 32, 64>}, {pipeline_mode = #tpu.pipeline_mode<synchronous>, transform_indices = @transform_3, window_bounds = array<i64: 8, 64>}, {pipeline_mode = #tpu.pipeline_mode<synchronous>, transform_indices = @transform_4, window_bounds = array<i64: 1, 64>}, {pipeline_mode = #tpu.pipeline_mode<synchronous>, transform_indices = @transform_5, window_bounds = array<i64: 64, 64>}, {pipeline_mode = #tpu.pipeline_mode<synchronous>, transform_indices = @transform_6, window_bounds = array<i64: 1, 64>}, {pipeline_mode = #tpu.pipeline_mode<synchronous>, transform_indices = @transform_7, window_bounds = array<i64: 64, 2>}, {pipeline_mode = #tpu.pipeline_mode<synchronous>, transform_indices = @transform_8, window_bounds = array<i64: 1, 2>}, {transform_indices = @transform_9, window_bounds = array<i64: 2, 2>}]} {
    %c0 = arith.constant 0 : index
    %c0_0 = arith.constant 0 : index
    %0 = vector.load %arg1[%c0, %c0_0] : memref<2x32xf32, #tpu.memory_space<vmem>>, vector<2x32xf32>
    %c0_1 = arith.constant 0 : index
    %c0_2 = arith.constant 0 : index
    %1 = vector.load %arg3[%c0_1, %c0_2] : memref<32x64xf32, #tpu.memory_space<vmem>>, vector<32x64xf32>
    %cst = arith.constant dense<0.000000e+00> : vector<2x64xf32>
    %2 = tpu.matmul %0, %1, %cst {dimension_numbers = #tpu.dot_dimension_numbers<[1], [0], [0], [1], [0, 0, 1, 1], [], []>} : vector<2x32xf32>, vector<32x64xf32>, vector<2x64xf32> -> vector<2x64xf32>
    %c0_3 = arith.constant 0 : index
    %c0_4 = arith.constant 0 : index
    %3 = vector.load %arg2[%c0_3, %c0_4] : memref<2x8xf32, #tpu.memory_space<vmem>>, vector<2x8xf32>
    %c0_5 = arith.constant 0 : index
    %c0_6 = arith.constant 0 : index
    %4 = vector.load %arg4[%c0_5, %c0_6] : memref<8x64xf32, #tpu.memory_space<vmem>>, vector<8x64xf32>
    %cst_7 = arith.constant dense<0.000000e+00> : vector<2x64xf32>
    %5 = tpu.matmul %3, %4, %cst_7 {dimension_numbers = #tpu.dot_dimension_numbers<[1], [0], [0], [1], [0, 0, 1, 1], [], []>} : vector<2x8xf32>, vector<8x64xf32>, vector<2x64xf32> -> vector<2x64xf32>
    %6 = arith.addf %2, %5 : vector<2x64xf32>
    %c0_8 = arith.constant 0 : index
    %c0_9 = arith.constant 0 : index
    %7 = vector.load %arg5[%c0_8, %c0_9] : memref<1x64xf32, #tpu.memory_space<vmem>>, vector<1x64xf32>
    %8 = vector.broadcast %7 : vector<1x64xf32> to vector<2x64xf32>
    %9 = arith.addf %6, %8 : vector<2x64xf32>
    %cst_10 = arith.constant 0.000000e+00 : f32
    %10 = vector.broadcast %cst_10 : f32 to vector<2x64xf32>
    %11 = arith.maximumf %9, %10 : vector<2x64xf32>
    %c0_11 = arith.constant 0 : index
    %c0_12 = arith.constant 0 : index
    %12 = vector.load %arg6[%c0_11, %c0_12] : memref<64x64xf32, #tpu.memory_space<vmem>>, vector<64x64xf32>
    %cst_13 = arith.constant dense<0.000000e+00> : vector<2x64xf32>
    %13 = tpu.matmul %11, %12, %cst_13 {dimension_numbers = #tpu.dot_dimension_numbers<[1], [0], [0], [1], [0, 0, 1, 1], [], []>} : vector<2x64xf32>, vector<64x64xf32>, vector<2x64xf32> -> vector<2x64xf32>
    %c0_14 = arith.constant 0 : index
    %c0_15 = arith.constant 0 : index
    %14 = vector.load %arg7[%c0_14, %c0_15] : memref<1x64xf32, #tpu.memory_space<vmem>>, vector<1x64xf32>
    %15 = vector.broadcast %14 : vector<1x64xf32> to vector<2x64xf32>
    %16 = arith.addf %13, %15 : vector<2x64xf32>
    %cst_16 = arith.constant 0.000000e+00 : f32
    %17 = vector.broadcast %cst_16 : f32 to vector<2x64xf32>
    %18 = arith.maximumf %16, %17 : vector<2x64xf32>
    %c0_17 = arith.constant 0 : index
    %c0_18 = arith.constant 0 : index
    %19 = vector.load %arg8[%c0_17, %c0_18] : memref<64x2xf32, #tpu.memory_space<vmem>>, vector<64x2xf32>
    %cst_19 = arith.constant dense<0.000000e+00> : vector<2x2xf32>
    %20 = tpu.matmul %18, %19, %cst_19 {dimension_numbers = #tpu.dot_dimension_numbers<[1], [0], [0], [1], [0, 0, 1, 1], [], []>} : vector<2x64xf32>, vector<64x2xf32>, vector<2x2xf32> -> vector<2x2xf32>
    %c0_20 = arith.constant 0 : index
    %c0_21 = arith.constant 0 : index
    %21 = vector.load %arg9[%c0_20, %c0_21] : memref<1x2xf32, #tpu.memory_space<vmem>>, vector<1x2xf32>
    %22 = vector.broadcast %21 : vector<1x2xf32> to vector<2x2xf32>
    %23 = arith.addf %20, %22 : vector<2x2xf32>
    %c0_22 = arith.constant 0 : index
    %c0_23 = arith.constant 0 : index
    %24 = vector.load %arg10[%c0_22, %c0_23] : memref<2x2xf32, #tpu.memory_space<vmem>>, vector<2x2xf32>
    tpu.vector_store %arg10[%c0_22, %c0_23], %23 {strides = array<i32>} : memref<2x2xf32, #tpu.memory_space<vmem>>, vector<2x2xf32>,
    return
  }
  func.func @transform_0(%arg0: i32) -> (i32, i32) {
    %c0_i32 = arith.constant 0 : i32
    %c0_i32_0 = arith.constant 0 : i32
    return %arg0, %c0_i32 : i32, i32
  }
  func.func @transform_1(%arg0: i32) -> (i32, i32) {
    %c0_i32 = arith.constant 0 : i32
    %c0_i32_0 = arith.constant 0 : i32
    return %arg0, %c0_i32 : i32, i32
  }
  func.func @transform_2(%arg0: i32) -> (i32, i32) {
    %c0_i32 = arith.constant 0 : i32
    %c0_i32_0 = arith.constant 0 : i32
    %c0_i32_1 = arith.constant 0 : i32
    return %c0_i32, %c0_i32_0 : i32, i32
  }
  func.func @transform_3(%arg0: i32) -> (i32, i32) {
    %c0_i32 = arith.constant 0 : i32
    %c0_i32_0 = arith.constant 0 : i32
    %c0_i32_1 = arith.constant 0 : i32
    return %c0_i32, %c0_i32_0 : i32, i32
  }
  func.func @transform_4(%arg0: i32) -> (i32, i32) {
    %c0_i32 = arith.constant 0 : i32
    %c0_i32_0 = arith.constant 0 : i32
    %c0_i32_1 = arith.constant 0 : i32
    return %c0_i32, %c0_i32_0 : i32, i32
  }
  func.func @transform_5(%arg0: i32) -> (i32, i32) {
    %c0_i32 = arith.constant 0 : i32
    %c0_i32_0 = arith.constant 0 : i32
    %c0_i32_1 = arith.constant 0 : i32
    return %c0_i32, %c0_i32_0 : i32, i32
  }
  func.func @transform_6(%arg0: i32) -> (i32, i32) {
    %c0_i32 = arith.constant 0 : i32
    %c0_i32_0 = arith.constant 0 : i32
    %c0_i32_1 = arith.constant 0 : i32
    return %c0_i32, %c0_i32_0 : i32, i32
  }
  func.func @transform_7(%arg0: i32) -> (i32, i32) {
    %c0_i32 = arith.constant 0 : i32
    %c0_i32_0 = arith.constant 0 : i32
    %c0_i32_1 = arith.constant 0 : i32
    return %c0_i32, %c0_i32_0 : i32, i32
  }
  func.func @transform_8(%arg0: i32) -> (i32, i32) {
    %c0_i32 = arith.constant 0 : i32
    %c0_i32_0 = arith.constant 0 : i32
    %c0_i32_1 = arith.constant 0 : i32
    return %c0_i32, %c0_i32_0 : i32, i32
  }
  func.func @transform_9(%arg0: i32) -> (i32, i32) {
    %c0_i32 = arith.constant 0 : i32
    %c0_i32_0 = arith.constant 0 : i32
    return %arg0, %c0_i32 : i32, i32
  }
}

</mosaic_0001>

<bundles_post_ra>
// kernel: tpu_custom_call.1
= control target key start
LH: loop header
LB: loop body
LE: loop exit
PB: predicated region body
PF: predicated region fallthrough
CT: control target
= control target key end

     0   :  { %14 = vsyncpa [#allocation3], 0  ;;  %s472_s0 = inlined_call_operand.vmem [shape: f32[2,32], index: 0, kind: input, shape index: {}]   ;;  %s473_s1 = inlined_call_operand.vmem [shape: f32[2,8], index: 1, kind: input, shape index: {}]   ;;  %s474_s2 = inlined_call_operand.hbm [shape: f32[32,64], index: 2, kind: input, shape index: {}]   ;;  %s475_s3 = inlined_call_operand.hbm [shape: f32[8,64], index: 3, kind: input, shape index: {}]   ;;  %s476_s4 = inlined_call_operand.vmem [shape: f32[1,64], index: 4, kind: input, shape index: {}]   ;;  %s477_s5 = inlined_call_operand.vmem [shape: f32[64,64], index: 5, kind: input, shape index: {}]   ;;  %s478_s6 = inlined_call_operand.hbm [shape: f32[1,64], index: 6, kind: input, shape index: {}]   ;;  %s479_s7 = inlined_call_operand.vmem [shape: f32[64,2], index: 7, kind: input, shape index: {}]   ;;  %s480_s8 = inlined_call_operand.vmem [shape: f32[1,2], index: 8, kind: input, shape index: {}]   ;;  %s481_s9 = inlined_call_operand.hbm [shape: f32[2,2], index: 9, kind: output, shape index: {}]  }
   0x1   :  { %15 = vsyncpa [#allocation6], 0  ;;  %s39_s11 = sshll.u32 %s475_s3, 4  ;;  %s40_s11 = int_to_ptr.hbm [resolvable:$true] %s39_s11 }
   0x2   :  { %16 = vsyncpa [#allocation4], 0  ;;  %s344_s12 = smov [#allocation5]   ;;  %s25_s16 = sshll.u32 %s474_s2, 4  ;;  %s26_s16 = int_to_ptr.hbm [resolvable:$true] %s25_s16 }
   0x3   :  { %s41_s13 = sshll.u32 %s344_s12, 4  ;;  %s345_s17 = smov [#allocation2]   ;;  %s42_s13 = int_to_ptr.vmem [resolvable:$true] %s41_s13 }
   0x4   :  { %44 = dma.hbm_to_vmem [thread:$0]  %s40_s11, 128, %s42_s13, [#allocation6]  }
   0x5   :  { %s27_s18 = sshll.u32 %s345_s17, 4  ;;  %s346_s19 = smov 128   ;;  %s28_s18 = int_to_ptr.vmem [resolvable:$true] %s27_s18 }
   0x6   :  { %s347_s20 = smov 8   ;;  %s54_s3 = sshll.u32 %s478_s6, 4  ;;  %s55_s3 = int_to_ptr.hbm [resolvable:$true] %s54_s3 }
   0x7   :  { %33 = dma.hbm_to_vmem [thread:$0]  %s26_s16, 512, %s28_s18, [#allocation3], %s346_s19, %s346_s19, %s347_s20  }
   0x8   :  { %s348_s23 = smov [#allocation7]  }
   0x9   :  { %s56_s24 = sshll.u32 %s348_s23, 4  ;;  %s57_s24 = int_to_ptr.vmem [resolvable:$true] %s56_s24 }
   0xa   :  { %59 = dma.hbm_to_vmem [thread:$0]  %s55_s3, 16, %s57_s24, [#allocation6]  }
   0xb   :  { %338 = dma.done.wait [#allocation3], 512  }
   0xc   :  { %339 = vsyncadd [#allocation3], 4294966784 }
   0xd   :  { %340 = dma.done.wait [#allocation6], 144  }
   0xe   :  { %341 = vsyncadd [#allocation6], 4294967152  ;;  %v80_v0 = vld [vmem:[#allocation2 + $0x18] sm:$0xff]  ;;  %v79_v1 = vld [vmem:[#allocation2 + $0x10] sm:$0xff]  ;;  %vm83_vm0 = vcmask 64512   ;;  %vm107_vm1 = vcmask 261120  }
   0xf   :  { %123 = vmatpush.msra.mxu1 %v80_v0  ;;  %v82_v2 = vld [vmem:[#allocation5] sm:$0xff]  ;;  %v78_v4 = vld [vmem:[#allocation2 + $0x8] sm:$0xff]  ;;  %v144_v5 = vld [vmem:[%s477_s5 + $0x38] sm:$0xff]  ;;  %vm149_vm2 = vcmask 523264   ;;  %s349_s13 = smov [#allocation8]   ;;  %s218_s16 = sshll.u32 %s481_s9, 4  ;;  %s219_s16 = int_to_ptr.hbm [resolvable:$true] %s218_s16 }
  0x10   :  { %v81_v3 = vld [vmem:[%s473_s1] sm:$0x3]  ;;  %102 = vmatpush.msra.mxu0 %v82_v2  ;;  %v143_v6 = vld [vmem:[%s477_s5 + $0x30] sm:$0xff]  ;;  %161 = vmatpush.msra.mxu2 %v144_v5  ;;  %v142_v9 = vld [vmem:[%s477_s5 + $0x28] sm:$0xff]  ;;  %s216_s14 = sshll.u32 %s349_s13, 4  ;;  %vm209_vm3 = vcmask 9216   ;;  %s217_s14 = int_to_ptr.vmem [resolvable:$true] %s216_s14 }
  0x11   :  { %124 = vmatpush.msra.mxu1 %v79_v1  ;;  %229 = vmatmul.msk.f32.vlgmr.msra.gmra.mxu0 %vm83_vm0, %v81_v3  ;;  %v77_v7 = vld [vmem:[#allocation2] sm:$0xff]  ;;  %v140_v11 = vld [vmem:[%s477_s5 + $0x18] sm:$0xff]  ;;  %v139_v12 = vld [vmem:[%s477_s5 + $0x10] sm:$0xff] }
  0x12   :  { %v76_v8 = vld [vmem:[%s472_s0] sm:$0x3]  ;;  %162 = vmatpush.msra.mxu2 %v143_v6  ;;  %v138_v13 = vld [vmem:[%s477_s5 + $0x8] sm:$0xff]  ;;  %v181_v15 = vld [vmem:[%s479_s7 + $0x38] sm:$0xff] }
  0x13   :  { %125 = vmatpush.msra.mxu1 %v78_v4  ;;  %v141_v10 = vld [vmem:[%s477_s5 + $0x20] sm:$0xff]  ;;  %v180_v16 = vld [vmem:[%s479_s7 + $0x30] sm:$0xff]  ;;  %197 = vmatpush.msra.mxu3 %v181_v15  ;;  %v179_v17 = vld [vmem:[%s479_s7 + $0x28] sm:$0xff] }
  0x14   :  { %163 = vmatpush.msra.mxu2 %v142_v9  ;;  %v137_v14 = vld [vmem:[%s477_s5] sm:$0xff]  ;;  %v177_v19 = vld [vmem:[%s479_s7 + $0x18] sm:$0xff]  ;;  %v176_v26 = vld [vmem:[%s479_s7 + $0x10] sm:$0xff] }
  0x15   :  { %126 = vmatpush.msra.mxu1 %v77_v7  ;;  %198 = vmatpush.msra.mxu3 %v180_v16  ;;  %v178_v18 = vld [vmem:[%s479_s7 + $0x20] sm:$0xff]  ;;  %v175_v27 = vld [vmem:[%s479_s7 + $0x8] sm:$0xff] }
  0x16   :  { %230 = vmatmul.msk.f32.vlgmr.msra.gmra.mxu1 %vm107_vm1, %v76_v8  ;;  %164 = vmatpush.msra.mxu2 %v141_v10  ;;  %v239_v21 = vld [vmem:[%s476_s4] ss:$0 sm:$0xff]  ;;  %v240_v29 = vld [vmem:[#allocation7] ss:$0 sm:$0xff] }
  0x17   :  { %199 = vmatpush.msra.mxu3 %v179_v17  ;;  %v174_v28 = vld [vmem:[%s479_s7] sm:$0xff] }
  0x18   :  { %165 = vmatpush.msra.mxu2 %v140_v11  ;;  %v241_v33 = vld [vmem:[%s480_s8] ss:$0 sm:$0xff] }
  0x19   :  { %200 = vmatpush.msra.mxu3 %v178_v18 }
  0x1a   :  { %166 = vmatpush.msra.mxu2 %v139_v12 }
  0x1b   :  { %201 = vmatpush.msra.mxu3 %v177_v19 }
  0x1c   :  { %167 = vmatpush.msra.mxu2 %v138_v13 }
  0x1d   :  { %202 = vmatpush.msra.mxu3 %v176_v26 }
  0x1e   :  { %168 = vmatpush.msra.mxu2 %v137_v14 }
  0x1f   :  { %203 = vmatpush.msra.mxu3 %v175_v27 }
  0x21   :  { %204 = vmatpush.msra.mxu3 %v174_v28 }
  0x8e   :  { %v104_v20 = vpop.f32.mrf.mxu0 }
  0x93   :  { %v128_v22 = vpop.f32.mrf.mxu1 }
  0x94   :  { %v129_v23 = vadd.f32 %v128_v22, %v104_v20 }
  0x96   :  { %v135_v24 = vadd.f32 %v239_v21, %v129_v23 }
  0x98   :  { %v136_v25 = vmax.f32 %v135_v24, 0.0 }
  0x9a   :  { %231 = vmatmul.msk.f32.vlgmr.msra.gmra.mxu2 %vm149_vm2, %v136_v25 }
 0x11d   :  { %v170_v30 = vpop.f32.mrf.mxu2 }
 0x11e   :  { %v171_v31 = vadd.f32 %v240_v29, %v170_v30 }
 0x120   :  { %v173_v32 = vmax.f32 %v171_v31, 0.0 }
 0x122   :  { %232 = vmatmul.msk.f32.vlgmr.msra.gmra.mxu3 %vm149_vm2, %v173_v32 }
 0x1a5   :  { %v206_v34 = vpop.f32.mrf.mxu3 }
 0x1a6   :  { %v207_v35 = vadd.f32 %v241_v33, %v206_v34 }
 0x1a8   :  { %210 = vst.msk [vmem:[#allocation8] sm:$0x3] %vm209_vm3, %v207_v35 }
 0x1a9   :  { %221 = dma.vmem_to_hbm [thread:$0]  %s217_s14, 32, %s219_s16, [#allocation4]  }
 0x1aa   :  { %342 = dma.done.wait [#allocation4], 32  }
 0x1ab   :  { %343 = vsyncadd [#allocation4], 4294967264 }
 0x1ac   :  { %226 = vsyncpa [#allocation3], 1 }
 0x1ad   :  { %227 = vsyncpa [#allocation6], 1 }
 0x1ae   :  { %228 = vsyncpa [#allocation4], 1 }

</bundles_post_ra>
